<compile_context>
chip_gen: v5e
topology: v5e:2x2
jax: 0.10.0
libtpu: 0.0.40
codegen_flags: <defaults>
</compile_context>

<pallas_src>
import functools

import jax
import jax.numpy as jnp
from jax.experimental import pallas as pl
from jax.experimental.pallas import tpu as pltpu


def _round_up(x, m):
    return ((x + m - 1) // m) * m


def _vmem_limit(estimate_bytes):
    # estimate + 30% + 2 MiB headroom, clamped to [16 MiB, 56 MiB]
    # (56 MiB stays safe on v7x's 64 MiB-per-core VMEM).
    return int(min(max(int(estimate_bytes * 1.3) + (2 << 20), 16 << 20), 56 << 20))


# --------------------------- Kernel 1: prologue ------------------------------
def mlm_prologue_kernel(x_ref, w1_ref, b1_ref, gamma_ref, beta_ref, act_ref):
    """Linear1 -> ReLU -> LayerNorm for one row tile. act_ref: compute dtype."""
    x = x_ref[...]                                            # (TM1, H)
    h = jnp.dot(x, w1_ref[...], preferred_element_type=jnp.float32)
    h = h + b1_ref[...].astype(jnp.float32)                   # (1, H) broadcast
    h = jnp.maximum(h, 0.0)
    # LayerNorm over the full (never-tiled) hidden axis, eps = 1e-5, f32 math.
    mean = jnp.mean(h, axis=-1, keepdims=True)
    centered = h - mean
    var = jnp.mean(centered * centered, axis=-1, keepdims=True)
    h = centered * jax.lax.rsqrt(var + 1e-5)
    h = h * gamma_ref[...].astype(jnp.float32) + beta_ref[...].astype(jnp.float32)
    act_ref[...] = h.astype(act_ref.dtype)                    # single cast here


# --------------------------- Kernel 2: vocab GEMM ----------------------------
def mlm_vocab_matmul_kernel(act_ref, w2_ref, b2_ref, o_ref):
    """One (row tile, vocab tile) output block: act @ w2 + b2."""
    out = jnp.dot(act_ref[...], w2_ref[...], preferred_element_type=jnp.float32)
    out = out + b2_ref[...].astype(jnp.float32)
    o_ref[...] = out.astype(o_ref.dtype)


@functools.partial(
    jax.jit,
    static_argnames=("compute_dtype", "out_dtype", "tm", "tn", "tm_prologue"))
def mask_lm_forward(X, pred_positions, params, *,
                    compute_dtype=jnp.bfloat16, out_dtype=jnp.float32,
                    tm=1024, tn=2048, tm_prologue=512):
    """Reproduces MaskLM.forward.

    X:              (batch, seq_len, num_hiddens) float32
    pred_positions: (batch, num_pred) int32
    returns:        (batch, num_pred, vocab_size) out_dtype
    """
    w1, b1, gamma, beta, w2, b2 = params
    batch, _, H = X.shape
    num_pred = pred_positions.shape[1]
    V = w2.shape[1]
    M = batch * num_pred

    cbytes = jnp.dtype(compute_dtype).itemsize
    obytes = jnp.dtype(out_dtype).itemsize

    # --- gather masked positions (plain-JAX glue) ----------------------------
    flat_pos = pred_positions.reshape(-1)                     # (M,)
    batch_idx = jnp.repeat(jnp.arange(batch), num_pred)       # (M,)
    masked_X = X[batch_idx, flat_pos].astype(compute_dtype)   # (M, H)

    # =================== Kernel 1: Linear1 -> ReLU -> LayerNorm ==============
    TM1 = min(tm_prologue, _round_up(M, 16))                  # multiple of 16
    grid1 = (pl.cdiv(M, TM1),)
    k1_vmem = (2 * TM1 * H * cbytes        # x blocks (double-buffered)
               + 2 * H * H * cbytes        # w1 (resident)
               + 6 * H * 4                 # b1 / gamma / beta
               + 2 * TM1 * H * cbytes)     # act output blocks

    act = pl.pallas_call(
        mlm_prologue_kernel,
        out_shape=jax.ShapeDtypeStruct((M, H), compute_dtype),
        grid=grid1,
        in_specs=[
            pl.BlockSpec((TM1, H), lambda i: (i, 0)),          # gathered tokens
            pl.BlockSpec((H, H), lambda i: (0, 0)),            # w1 (resident)
            pl.BlockSpec((1, H), lambda i: (0, 0)),            # b1
            pl.BlockSpec((1, H), lambda i: (0, 0)),            # gamma
            pl.BlockSpec((1, H), lambda i: (0, 0)),            # beta
        ],
        out_specs=pl.BlockSpec((TM1, H), lambda i: (i, 0)),
        compiler_params=pltpu.CompilerParams(
            dimension_semantics=("parallel",),
            vmem_limit_bytes=_vmem_limit(k1_vmem)),
    )(masked_X,
      w1.astype(compute_dtype),
      b1.astype(jnp.float32),
      gamma.astype(jnp.float32),
      beta.astype(jnp.float32))

    # =================== Kernel 2: act @ w2 + b2 =============================
    TM = min(tm, _round_up(M, 16))                             # multiple of 16
    TN = min(tn, _round_up(V, 128))                            # multiple of 128

    def _k2_vmem(tm_, tn_):
        return (2 * tm_ * H * cbytes       # act blocks
                + 2 * H * tn_ * cbytes     # w2 blocks
                + 2 * tn_ * 4              # b2 blocks
                + 2 * tm_ * tn_ * obytes)  # output blocks

    budget = 52 * 1024 * 1024              # fits every generation incl. v7x
    while _k2_vmem(TM, TN) > budget and TM > 256:
        TM = max(256, _round_up(TM // 2, 16))
    while _k2_vmem(TM, TN) > budget and TN > 256:
        TN = max(256, _round_up(TN // 2, 128))

    # Vocab axis OUTER => each w2 tile is read from HBM exactly once per core
    # (block index depends only on j); the small activation is re-streamed.
    grid2 = (pl.cdiv(V, TN), pl.cdiv(M, TM))

    logits = pl.pallas_call(
        mlm_vocab_matmul_kernel,
        out_shape=jax.ShapeDtypeStruct((M, V), out_dtype),     # no V/M padding
        grid=grid2,
        in_specs=[
            pl.BlockSpec((TM, H), lambda j, i: (i, 0)),         # activation
            pl.BlockSpec((H, TN), lambda j, i: (0, j)),         # w2 (once per j)
            pl.BlockSpec((1, TN), lambda j, i: (0, j)),         # b2
        ],
        out_specs=pl.BlockSpec((TM, TN), lambda j, i: (i, j)),
        compiler_params=pltpu.CompilerParams(
            dimension_semantics=("parallel", "parallel"),       # no accumulation
            vmem_limit_bytes=_vmem_limit(_k2_vmem(TM, TN))),
    )(act, w2.astype(compute_dtype), b2.astype(jnp.float32))

    return logits.reshape(batch, num_pred, V)


def init_params(key, num_hiddens, vocab_size):
    """Deterministic synthetic parameters (shapes match nn.LazyLinear / LayerNorm)."""
    k1, k2, k3, k4 = jax.random.split(key, 4)
    scale = 1.0 / jnp.sqrt(num_hiddens)
    w1 = jax.random.uniform(k1, (num_hiddens, num_hiddens), jnp.float32, -scale, scale)
    b1 = jax.random.uniform(k2, (1, num_hiddens), jnp.float32, -scale, scale)
    gamma = jnp.ones((1, num_hiddens), jnp.float32)
    beta = jnp.zeros((1, num_hiddens), jnp.float32)
    w2 = jax.random.uniform(k3, (num_hiddens, vocab_size), jnp.float32, -scale, scale)
    b2 = jax.random.uniform(k4, (1, vocab_size), jnp.float32, -scale, scale)
    return (w1, b1, gamma, beta, w2, b2)


def reference_forward(X, pred_positions, params):
    """Pure-JAX f32 reference matching the PyTorch module semantics."""
    w1, b1, gamma, beta, w2, b2 = params
    batch = X.shape[0]
    num_pred = pred_positions.shape[1]
    flat_pos = pred_positions.reshape(-1)
    batch_idx = jnp.repeat(jnp.arange(batch), num_pred)
    masked_X = X[batch_idx, flat_pos].reshape(batch, num_pred, -1)
    h = masked_X @ w1 + b1[0]
    h = jnp.maximum(h, 0.0)
    mean = jnp.mean(h, axis=-1, keepdims=True)
    var = jnp.mean((h - mean) ** 2, axis=-1, keepdims=True)
    h = (h - mean) / jnp.sqrt(var + 1e-5) * gamma[0] + beta[0]
    return h @ w2 + b2[0]


if __name__ == "__main__":
    key = jax.random.PRNGKey(0)
    k_x, k_p, k_w = jax.random.split(key, 3)

    batch, seq_len, num_hiddens = 2, 8, 32
    num_pred, vocab_size = 4, 64

    X = jax.random.normal(k_x, (batch, seq_len, num_hiddens), jnp.float32)
    pred_positions = jax.random.randint(k_p, (batch, num_pred), 0, seq_len,
                                        dtype=jnp.int32)
    params = init_params(k_w, num_hiddens, vocab_size)

    ref = reference_forward(X, pred_positions, params)

    # f32 path: verifies the kernel math tightly.
    out_f32 = jax.block_until_ready(
        mask_lm_forward(X, pred_positions, params,
                        compute_dtype=jnp.float32, out_dtype=jnp.float32))
    assert out_f32.shape == (batch, num_pred, vocab_size)
    assert jnp.allclose(out_f32, ref, atol=1e-4, rtol=1e-4), "f32 kernel mismatch"

    # bf16 compute, f32 logits (default production path): looser tolerance.
    out_bf16 = jax.block_until_ready(
        mask_lm_forward(X, pred_positions, params,
                        compute_dtype=jnp.bfloat16, out_dtype=jnp.float32))
    assert out_bf16.shape == (batch, num_pred, vocab_size)
    assert jnp.allclose(out_bf16, ref, atol=1e-1, rtol=1e-1), "bf16 kernel mismatch"

    # bf16 compute + bf16 logits (minimum-HBM configuration).
    out_bf16o = jax.block_until_ready(
        mask_lm_forward(X, pred_positions, params,
                        compute_dtype=jnp.bfloat16, out_dtype=jnp.bfloat16))
    assert out_bf16o.shape == (batch, num_pred, vocab_size)
    assert jnp.allclose(out_bf16o.astype(jnp.float32), ref,
                        atol=1e-1, rtol=1e-1), "bf16-output kernel mismatch"

    print("KERNEL_OK")
</pallas_src>

<mosaic_0001>
module attributes {stable_mosaic.version = 11 : i64} {
  func.func @mlm_prologue_kernel(%arg0: i32, %arg1: memref<16x32xf32, #tpu.memory_space<vmem>>, %arg2: memref<32x32xf32, #tpu.memory_space<vmem>>, %arg3: memref<1x32xf32, #tpu.memory_space<vmem>>, %arg4: memref<1x32xf32, #tpu.memory_space<vmem>>, %arg5: memref<1x32xf32, #tpu.memory_space<vmem>>, %arg6: memref<16x32xf32, #tpu.memory_space<vmem>>) attributes {dimension_semantics = [#tpu.dimension_semantics<parallel>], iteration_bounds = array<i64: 1>, scalar_prefetch = 0 : i64, scratch_operands = 0 : i64, tpu.core_type = #tpu.core_type<tc>, window_params = [{transform_indices = @transform_0, window_bounds = array<i64: 16, 32>}, {pipeline_mode = #tpu.pipeline_mode<synchronous>, transform_indices = @transform_1, window_bounds = array<i64: 32, 32>}, {pipeline_mode = #tpu.pipeline_mode<synchronous>, transform_indices = @transform_2, window_bounds = array<i64: 1, 32>}, {pipeline_mode = #tpu.pipeline_mode<synchronous>, transform_indices = @transform_3, window_bounds = array<i64: 1, 32>}, {pipeline_mode = #tpu.pipeline_mode<synchronous>, transform_indices = @transform_4, window_bounds = array<i64: 1, 32>}, {transform_indices = @transform_5, window_bounds = array<i64: 16, 32>}]} {
    %c0 = arith.constant 0 : index
    %c0_0 = arith.constant 0 : index
    %0 = vector.load %arg1[%c0, %c0_0] : memref<16x32xf32, #tpu.memory_space<vmem>>, vector<16x32xf32>
    %c0_1 = arith.constant 0 : index
    %c0_2 = arith.constant 0 : index
    %1 = vector.load %arg2[%c0_1, %c0_2] : memref<32x32xf32, #tpu.memory_space<vmem>>, vector<32x32xf32>
    %cst = arith.constant dense<0.000000e+00> : vector<16x32xf32>
    %2 = tpu.matmul %0, %1, %cst {dimension_numbers = #tpu.dot_dimension_numbers<[1], [0], [0], [1], [0, 0, 1, 1], [], []>} : vector<16x32xf32>, vector<32x32xf32>, vector<16x32xf32> -> vector<16x32xf32>
    %c0_3 = arith.constant 0 : index
    %c0_4 = arith.constant 0 : index
    %3 = vector.load %arg3[%c0_3, %c0_4] : memref<1x32xf32, #tpu.memory_space<vmem>>, vector<1x32xf32>
    %4 = vector.broadcast %3 : vector<1x32xf32> to vector<16x32xf32>
    %5 = arith.addf %2, %4 : vector<16x32xf32>
    %cst_5 = arith.constant 0.000000e+00 : f32
    %6 = vector.broadcast %cst_5 : f32 to vector<16x32xf32>
    %7 = arith.maximumf %5, %6 : vector<16x32xf32>
    %cst_6 = arith.constant dense<0.000000e+00> : vector<16xf32>
    %8 = vector.multi_reduction <add>, %7, %cst_6 [1] : vector<16x32xf32> to vector<16xf32>
    %9 = vector.shape_cast %8 : vector<16xf32> to vector<16x1xf32>
    %cst_7 = arith.constant 3.200000e+01 : f32
    %10 = vector.broadcast %cst_7 : f32 to vector<16x1xf32>
    %11 = arith.divf %9, %10 : vector<16x1xf32>
    %12 = vector.broadcast %11 : vector<16x1xf32> to vector<16x32xf32>
    %13 = arith.subf %7, %12 : vector<16x32xf32>
    %14 = arith.mulf %13, %13 : vector<16x32xf32>
    %cst_8 = arith.constant dense<0.000000e+00> : vector<16xf32>
    %15 = vector.multi_reduction <add>, %14, %cst_8 [1] : vector<16x32xf32> to vector<16xf32>
    %16 = vector.shape_cast %15 : vector<16xf32> to vector<16x1xf32>
    %cst_9 = arith.constant 3.200000e+01 : f32
    %17 = vector.broadcast %cst_9 : f32 to vector<16x1xf32>
    %18 = arith.divf %16, %17 : vector<16x1xf32>
    %cst_10 = arith.constant 9.99999974E-6 : f32
    %19 = vector.broadcast %cst_10 : f32 to vector<16x1xf32>
    %20 = arith.addf %18, %19 : vector<16x1xf32>
    %21 = math.rsqrt %20 : vector<16x1xf32>
    %22 = vector.broadcast %21 : vector<16x1xf32> to vector<16x32xf32>
    %23 = arith.mulf %13, %22 : vector<16x32xf32>
    %c0_11 = arith.constant 0 : index
    %c0_12 = arith.constant 0 : index
    %24 = vector.load %arg4[%c0_11, %c0_12] : memref<1x32xf32, #tpu.memory_space<vmem>>, vector<1x32xf32>
    %25 = vector.broadcast %24 : vector<1x32xf32> to vector<16x32xf32>
    %26 = arith.mulf %23, %25 : vector<16x32xf32>
    %c0_13 = arith.constant 0 : index
    %c0_14 = arith.constant 0 : index
    %27 = vector.load %arg5[%c0_13, %c0_14] : memref<1x32xf32, #tpu.memory_space<vmem>>, vector<1x32xf32>
    %28 = vector.broadcast %27 : vector<1x32xf32> to vector<16x32xf32>
    %29 = arith.addf %26, %28 : vector<16x32xf32>
    %c0_15 = arith.constant 0 : index
    %c0_16 = arith.constant 0 : index
    %30 = vector.load %arg6[%c0_15, %c0_16] : memref<16x32xf32, #tpu.memory_space<vmem>>, vector<16x32xf32>
    tpu.vector_store %arg6[%c0_15, %c0_16], %29 {strides = array<i32>} : memref<16x32xf32, #tpu.memory_space<vmem>>, vector<16x32xf32>,
    return
  }
  func.func @transform_0(%arg0: i32) -> (i32, i32) {
    %c0_i32 = arith.constant 0 : i32
    %c0_i32_0 = arith.constant 0 : i32
    return %arg0, %c0_i32 : i32, i32
  }
  func.func @transform_1(%arg0: i32) -> (i32, i32) {
    %c0_i32 = arith.constant 0 : i32
    %c0_i32_0 = arith.constant 0 : i32
    %c0_i32_1 = arith.constant 0 : i32
    return %c0_i32, %c0_i32_0 : i32, i32
  }
  func.func @transform_2(%arg0: i32) -> (i32, i32) {
    %c0_i32 = arith.constant 0 : i32
    %c0_i32_0 = arith.constant 0 : i32
    %c0_i32_1 = arith.constant 0 : i32
    return %c0_i32, %c0_i32_0 : i32, i32
  }
  func.func @transform_3(%arg0: i32) -> (i32, i32) {
    %c0_i32 = arith.constant 0 : i32
    %c0_i32_0 = arith.constant 0 : i32
    %c0_i32_1 = arith.constant 0 : i32
    return %c0_i32, %c0_i32_0 : i32, i32
  }
  func.func @transform_4(%arg0: i32) -> (i32, i32) {
    %c0_i32 = arith.constant 0 : i32
    %c0_i32_0 = arith.constant 0 : i32
    %c0_i32_1 = arith.constant 0 : i32
    return %c0_i32, %c0_i32_0 : i32, i32
  }
  func.func @transform_5(%arg0: i32) -> (i32, i32) {
    %c0_i32 = arith.constant 0 : i32
    %c0_i32_0 = arith.constant 0 : i32
    return %arg0, %c0_i32 : i32, i32
  }
}

module attributes {stable_mosaic.version = 11 : i64} {
  func.func @mlm_vocab_matmul_kernel(%arg0: i32, %arg1: i32, %arg2: memref<16x32xf32, #tpu.memory_space<vmem>>, %arg3: memref<32x128xf32, #tpu.memory_space<vmem>>, %arg4: memref<1x128xf32, #tpu.memory_space<vmem>>, %arg5: memref<16x128xf32, #tpu.memory_space<vmem>>) attributes {dimension_semantics = [#tpu.dimension_semantics<parallel>, #tpu.dimension_semantics<parallel>], iteration_bounds = array<i64: 1, 1>, scalar_prefetch = 0 : i64, scratch_operands = 0 : i64, tpu.core_type = #tpu.core_type<tc>, window_params = [{transform_indices = @transform_0, window_bounds = array<i64: 16, 32>}, {transform_indices = @transform_1, window_bounds = array<i64: 32, 128>}, {transform_indices = @transform_2, window_bounds = array<i64: 1, 128>}, {transform_indices = @transform_3, window_bounds = array<i64: 16, 128>}]} {
    %c0 = arith.constant 0 : index
    %c0_0 = arith.constant 0 : index
    %0 = vector.load %arg2[%c0, %c0_0] : memref<16x32xf32, #tpu.memory_space<vmem>>, vector<16x32xf32>
    %c0_1 = arith.constant 0 : index
    %c0_2 = arith.constant 0 : index
    %1 = vector.load %arg3[%c0_1, %c0_2] : memref<32x128xf32, #tpu.memory_space<vmem>>, vector<32x128xf32>
    %cst = arith.constant dense<0.000000e+00> : vector<16x128xf32>
    %2 = tpu.matmul %0, %1, %cst {dimension_numbers = #tpu.dot_dimension_numbers<[1], [0], [0], [1], [0, 0, 1, 1], [], []>} : vector<16x32xf32>, vector<32x128xf32>, vector<16x128xf32> -> vector<16x128xf32>
    %c0_3 = arith.constant 0 : index
    %c0_4 = arith.constant 0 : index
    %3 = vector.load %arg4[%c0_3, %c0_4] : memref<1x128xf32, #tpu.memory_space<vmem>>, vector<1x128xf32>
    %4 = vector.broadcast %3 : vector<1x128xf32> to vector<16x128xf32>
    %5 = arith.addf %2, %4 : vector<16x128xf32>
    %c0_5 = arith.constant 0 : index
    %c0_6 = arith.constant 0 : index
    %6 = vector.load %arg5[%c0_5, %c0_6] : memref<16x128xf32, #tpu.memory_space<vmem>>, vector<16x128xf32>
    tpu.vector_store %arg5[%c0_5, %c0_6], %5 {strides = array<i32>} : memref<16x128xf32, #tpu.memory_space<vmem>>, vector<16x128xf32>,
    return
  }
  func.func @transform_0(%arg0: i32, %arg1: i32) -> (i32, i32) {
    %c0_i32 = arith.constant 0 : i32
    %c0_i32_0 = arith.constant 0 : i32
    return %arg1, %c0_i32 : i32, i32
  }
  func.func @transform_1(%arg0: i32, %arg1: i32) -> (i32, i32) {
    %c0_i32 = arith.constant 0 : i32
    %c0_i32_0 = arith.constant 0 : i32
    return %c0_i32, %arg0 : i32, i32
  }
  func.func @transform_2(%arg0: i32, %arg1: i32) -> (i32, i32) {
    %c0_i32 = arith.constant 0 : i32
    %c0_i32_0 = arith.constant 0 : i32
    return %c0_i32, %arg0 : i32, i32
  }
  func.func @transform_3(%arg0: i32, %arg1: i32) -> (i32, i32) {
    %c0_i32 = arith.constant 0 : i32
    return %arg1, %arg0 : i32, i32
  }
}

</mosaic_0001>

<bundles_post_ra>
// kernel: mask_lm_forward.2
= control target key start
LH: loop header
LB: loop body
LE: loop exit
PB: predicated region body
PF: predicated region fallthrough
CT: control target
= control target key end

     0   :  { %vm30_vm0 = vcmask 261120   ;;  %v184_v15 = vmov 32.0   ;;  %s252_s0 = inlined_call_operand.vmem [shape: f32[8,32], index: 0, kind: input, shape index: {}]   ;;  %s253_s1 = inlined_call_operand.vmem [shape: f32[32,32], index: 1, kind: input, shape index: {}]   ;;  %s254_s2 = inlined_call_operand.vmem [shape: f32[1,32], index: 2, kind: input, shape index: {}]   ;;  %s255_s3 = inlined_call_operand.vmem [shape: f32[1,32], index: 3, kind: input, shape index: {}]   ;;  %s256_s4 = inlined_call_operand.vmem [shape: f32[1,32], index: 4, kind: input, shape index: {}]   ;;  %s257_s5 = inlined_call_operand.vmem [shape: f32[8,32], index: 5, kind: output, shape index: {}]  }
   0x1   :  { %v25_v0 = vld [vmem:[%s253_s1 + $0x18] sm:$0xff]  ;;  %v24_v1 = vld [vmem:[%s253_s1 + $0x10] sm:$0xff]  ;;  %v23_v2 = vld [vmem:[%s253_s1 + $0x8] sm:$0xff]  ;;  %178 = vrcp.f32 %v184_v15 }
   0x2   :  { %49 = vmatpush.msra.mxu0 %v25_v0  ;;  %170 = vmatpush.msra.mxu1 %v25_v0  ;;  %v22_v3 = vld [vmem:[%s253_s1] sm:$0xff]  ;;  %v21_v5 = vld [vmem:[%s252_s0 + $0x8] sm:$0xff] }
   0x3   :  { %v20_v4 = vld [vmem:[%s252_s0] sm:$0xff] }
   0x4   :  { %50 = vmatpush.msra.mxu0 %v24_v1  ;;  %171 = vmatpush.msra.mxu1 %v24_v1  ;;  %v175_v6 = vld [vmem:[%s254_s2] ss:$0 sm:$0xff] }
   0x5   :  { %v176_v45 = vld [vmem:[%s255_s3] ss:$0 sm:$0xff] }
   0x6   :  { %51 = vmatpush.msra.mxu0 %v23_v2  ;;  %172 = vmatpush.msra.mxu1 %v23_v2  ;;  %v177_v47 = vld [vmem:[%s256_s4] ss:$0 sm:$0xff] }
   0x7   :  { %v179_v16 = vpop.eup %178 }
   0x8   :  { %52 = vmatpush.msra.mxu0 %v22_v3  ;;  %173 = vmatpush.msra.mxu1 %v22_v3  ;;  %v69_v17 = vmul.f32 32.0, %v179_v16  ;;  %vm73_vm1 = vweird.f32 %v179_v16 }
   0x9   :  { %168 = vmatmul.msk.f32.vlgmr.msra.gmra.mxu0 %vm30_vm0, %v20_v4  ;;  %169 = vmatmul.msk.f32.vlgmr.msra.gmra.mxu1 %vm30_vm0, %v21_v5 }
   0xa   :  { %v70_v18 = vsub.f32 1.0, %v69_v17 }
   0xc   :  { %v71_v19 = vmul.f32 %v179_v16, %v70_v18 }
   0xe   :  { %v72_v20 = vadd.f32 %v179_v16, %v71_v19 }
  0x10   :  { %v74_v21 = vsel %vm73_vm1, %v179_v16, %v72_v20 }
  0x86   :  { %v54_v7 = vpop.f32.mrf.mxu0  ;;  %v57_v8 = vpop.f32.mrf.mxu1 }
  0x87   :  { %v55_v9 = vadd.f32 %v175_v6, %v54_v7  ;;  %v58_v11 = vadd.f32 %v175_v6, %v57_v8 }
  0x89   :  { %v60_v10 = vmax.f32 %v55_v9, 0.0  ;;  %v61_v13 = vmax.f32 %v58_v11, 0.0 }
  0x8b   :  { %v62_v12 = vsel %vm30_vm0, %v60_v10, 0.0  ;;  %v65_v14 = vsel %vm30_vm0, %v61_v13, 0.0 }
  0x8c   :  { %63 = vadd.xlane.f32.xlu0 %v62_v12 }
  0x94   :  { %66 = vadd.xlane.f32.xlu0 %v65_v14 }
  0xff   :  { %v64_v22 = vpop.xlane.xlu0 %63 }
 0x100   :  { %v75_v23 = vmul.f32 %v74_v21, %v64_v22 }
 0x102   :  { %v77_v24 = vsub.f32 %v60_v10, %v75_v23 }
 0x104   :  { %v79_v25 = vmul.f32 %v77_v24, %v77_v24 }
 0x106   :  { %v81_v26 = vsel %vm30_vm0, %v79_v25, 0.0 }
 0x107   :  { %82 = vadd.xlane.f32.xlu1 %v81_v26  ;;  %v67_v27 = vpop.xlane.xlu0 %66 }
 0x108   :  { %v76_v28 = vmul.f32 %v74_v21, %v67_v27 }
 0x10a   :  { %v78_v29 = vsub.f32 %v61_v13, %v76_v28 }
 0x10c   :  { %v80_v30 = vmul.f32 %v78_v29, %v78_v29 }
 0x10e   :  { %v84_v31 = vsel %vm30_vm0, %v80_v30, 0.0 }
 0x10f   :  { %85 = vadd.xlane.f32.xlu1 %v84_v31 }
 0x17a   :  { %v83_v32 = vpop.xlane.xlu1 %82 }
 0x17b   :  { %v87_v33 = vmul.f32 %v83_v32, %v74_v21 }
 0x17d   :  { %v89_v34 = vadd.f32 1e-05, %v87_v33 }
 0x17f   :  { %180 = vrsqrt.f32 %v89_v34  ;;  %vm97_vm3 = vweird.f32 %v89_v34 }
 0x182   :  { %v86_v35 = vpop.xlane.xlu1 %85 }
 0x183   :  { %v88_v36 = vmul.f32 %v86_v35, %v74_v21 }
 0x185   :  { %v181_v37 = vpop.eup %180  ;;  %v90_v38 = vadd.f32 1e-05, %v88_v36 }
 0x186   :  { %v92_v39 = vmul.f32 %v181_v37, %v89_v34  ;;  %vm98_vm2 = vweird.f32 %v181_v37 }
 0x187   :  { %182 = vrsqrt.f32 %v90_v38  ;;  %vm99_vm4 = vmor %vm97_vm3, %vm98_vm2 }
 0x188   :  { %v93_v40 = vmul.f32 %v181_v37, %v92_v39 }
 0x18a   :  { %v94_v41 = vmul.f32 0.5, %v93_v40 }
 0x18c   :  { %v95_v42 = vsub.f32 1.5, %v94_v41 }
 0x18d   :  { %v183_v43 = vpop.eup %182 }
 0x18e   :  { %v96_v44 = vmul.f32 %v181_v37, %v95_v42 }
 0x190   :  { %v100_v46 = vsel %vm99_vm4, %v181_v37, %v96_v44 }
 0x191   :  { %v111_v48 = vmul.f32 %v100_v46, %v77_v24 }
 0x193   :  { %v117_v49 = vmul.f32 %v176_v45, %v111_v48 }
 0x195   :  { %v123_v50 = vadd.f32 %v177_v47, %v117_v49 }
 0x197   :  { %125 = vst.msk [vmem:[#allocation2] sm:$0xff] %vm30_vm0, %v123_v50 }
 0x19e   :  { %v157_v51 = vld [vmem:[#allocation2] sm:$0xff] }
 0x19f   :  { %158 = vst [vmem:[%s257_s5] sm:$0xff] %v157_v51 }

// kernel: mask_lm_forward.3
= control target key start
LH: loop header
LB: loop body
LE: loop exit
PB: predicated region body
PF: predicated region fallthrough
CT: control target
= control target key end

     0   :  { %8 = vsyncpa [#allocation3], 0  ;;  %vm25_vm0 = vcmask 261120   ;;  %s158_s0 = inlined_call_operand.vmem [shape: f32[8,32], index: 0, kind: input, shape index: {}]   ;;  %s159_s1 = inlined_call_operand.vmem [shape: f32[32,64], index: 1, kind: input, shape index: {}]   ;;  %s160_s2 = inlined_call_operand.vmem [shape: f32[1,64], index: 2, kind: input, shape index: {}]   ;;  %s161_s3 = inlined_call_operand.hbm [shape: f32[8,64], index: 3, kind: output, shape index: {}]  }
   0x1   :  { %v20_v0 = vld [vmem:[%s159_s1 + $0x18] sm:$0xff]  ;;  %v19_v1 = vld [vmem:[%s159_s1 + $0x10] sm:$0xff]  ;;  %v18_v2 = vld [vmem:[%s159_s1 + $0x8] sm:$0xff] }
   0x2   :  { %44 = vmatpush.msra.mxu0 %v20_v0  ;;  %77 = vmatpush.msra.mxu1 %v20_v0  ;;  %v17_v3 = vld [vmem:[%s159_s1] sm:$0xff]  ;;  %v16_v5 = vld [vmem:[%s158_s0 + $0x8] sm:$0xff] }
   0x3   :  { %v15_v4 = vld [vmem:[%s158_s0] sm:$0xff] }
   0x4   :  { %45 = vmatpush.msra.mxu0 %v19_v1  ;;  %78 = vmatpush.msra.mxu1 %v19_v1  ;;  %v84_v6 = vld [vmem:[%s160_s2] ss:$0 sm:$0xff] }
   0x6   :  { %46 = vmatpush.msra.mxu0 %v18_v2  ;;  %79 = vmatpush.msra.mxu1 %v18_v2 }
   0x8   :  { %47 = vmatpush.msra.mxu0 %v17_v3  ;;  %80 = vmatpush.msra.mxu1 %v17_v3 }
   0x9   :  { %75 = vmatmul.msk.f32.vlgmr.msra.gmra.mxu0 %vm25_vm0, %v15_v4  ;;  %76 = vmatmul.msk.f32.vlgmr.msra.gmra.mxu1 %vm25_vm0, %v16_v5 }
  0x86   :  { %v49_v7 = vpop.f32.mrf.mxu0  ;;  %v52_v8 = vpop.f32.mrf.mxu1 }
  0x87   :  { %v50_v9 = vadd.f32 %v84_v6, %v49_v7  ;;  %v53_v10 = vadd.f32 %v84_v6, %v52_v8 }
  0x89   :  { %55 = vst [vmem:[#allocation2] sm:$0xff] %v50_v9 }
  0x8a   :  { %56 = vst [vmem:[#allocation2 + $0x8] sm:$0xff] %v53_v10 }
  0x8b   :  { %60 = vsyncadd [#allocation3], 128  ;;  %s63_s27 = sshll.u32 %s161_s3, 4  ;;  %s111_s0 = smov [#allocation2]   ;;  %s64_s27 = int_to_ptr.hbm [resolvable:$true] %s63_s27 }
  0x8c   :  { %s61_s28 = sshll.u32 %s111_s0, 4  ;;  %s112_s29 = smov 128   ;;  %s62_s28 = int_to_ptr.vmem [resolvable:$true] %s61_s28 }
  0x8d   :  { %s113_s30 = smov 8  }
  0x8e   :  { %69 = dma.vmem_to_hbm [thread:$0]  %s62_s28, 128, %s64_s27, [#allocation3], %s112_s29, %s112_s29, %s113_s30  }
  0x8f   :  { %109 = dma.done.wait [#allocation3], 256  }
  0x90   :  { %110 = vsyncadd [#allocation3], 4294967040 }
  0x91   :  { %74 = vsyncpa [#allocation3], 1 }

</bundles_post_ra>
